<compile_context>
chip_gen: v7x
topology: tpu7x:2x2x1
jax: 0.10.0
libtpu: 0.0.40
codegen_flags: <defaults>
</compile_context>

<pallas_src>
import functools

import jax
import jax.numpy as jnp
from jax import lax
from jax.experimental import pallas as pl
from jax.experimental.pallas import tpu as pltpu


def _calayer_kernel(x_ref, wc_ref, bc_ref, w3g_ref, o_ref, *, H, W):
    """One batch element: x_ref (1, C, H*W) -> o_ref (1, C, H*W)."""
    C = x_ref.shape[1]
    HW = H * W
    inv_hw = 1.0 / float(HW)

    x = x_ref[0].astype(jnp.float32)                        # (C, HW)

    # ---- channel statistics, single pass: var = E[x^2] - mean^2 ------------
    s1 = jnp.sum(x, axis=1, keepdims=True)                  # (C, 1)
    s2 = jnp.sum(x * x, axis=1, keepdims=True)              # (C, 1)
    mean = s1 * inv_hw
    var = jnp.maximum(s2 * inv_hw - mean * mean, 0.0)
    y0 = jnp.sqrt(var) + mean                               # stdv + avg_pool

    # ---- gate: conv_du on a 1x1 map == center-tap (C,C) matvec + bias ------
    wcf = wc_ref[...].astype(jnp.float32)                   # (C_out, C_in)
    gp = bc_ref[...].astype(jnp.float32)                    # (C, 1)
    if C <= 8:
        # C multiply-adds on (C,1) values: negligible next to the (C,HW) work
        # and avoids a (C,1)->(1,C) relayout / an MXU push for a tiny matvec.
        for i in range(C):
            gp = gp + wcf[:, i:i + 1] * y0[i:i + 1, :]
    else:
        gp = gp + jnp.dot(wcf, y0, preferred_element_type=jnp.float32,
                          precision=lax.Precision.HIGHEST)
    gate = jax.nn.sigmoid(gp)                               # (C, 1)

    # ---- 3x3 conv (c3, no bias) in flattened-spatial space ------------------
    # shift(a, s)[p] = a[p + s] (circular roll on the XLU).  The wrapped
    # entries are exactly the out-of-image taps and are zeroed by the masks.
    def shift(a, s):
        return pltpu.roll(a, shift=(-s) % HW, axis=1)

    lane = lax.broadcasted_iota(jnp.int32, (C, HW), 1)      # flat spatial idx
    colw = lane % W
    x_up = jnp.where(lane >= W, shift(x, -W), 0.0)          # x at (h-1, w): kh=0
    x_dn = jnp.where(lane < HW - W, shift(x, W), 0.0)       # x at (h+1, w): kh=2
    xs_by_kh = (x_up, x, x_dn)

    # Column sums: col_acc[kw][o,p] = sum_{kh,i} w[o,i,kh,kw] * xs_by_kh[kh][i,p]
    col_acc = []
    if C <= 8:
        # Tiny C: the MXU would run <4% occupied; unrolled VPU outer products
        # are exact f32.  Each accumulator starts from its first term.
        for kw in range(3):
            wmat = w3g_ref[kw].astype(jnp.float32)          # (C_out, 3*C_in)
            acc = None
            for kh in range(3):
                xs = xs_by_kh[kh]
                for i in range(C):
                    j = kh * C + i
                    t = wmat[:, j:j + 1] * xs[i:i + 1, :]
                    acc = t if acc is None else acc + t
            col_acc.append(acc)
    else:
        # Larger C: stack the 3 vertical taps into the contraction dim
        # (K = 3C), so 3 deeper MXU dots instead of 9 shallow ones.
        xstack = jnp.concatenate(xs_by_kh, axis=0)          # (3C, HW)
        for kw in range(3):
            wmat = w3g_ref[kw].astype(jnp.float32)          # (C_out, 3C)
            col_acc.append(jnp.dot(wmat, xstack,
                                   preferred_element_type=jnp.float32,
                                   precision=lax.Precision.HIGHEST))

    # Horizontal taps: roll each column sum by +-1 and mask the wrapped lane
    # (2 selects total instead of 6 per-tap selects).
    out = col_acc[1]                                        # kw=1 (dw=0), no mask
    out = out + jnp.where(colw >= 1, shift(col_acc[0], -1), 0.0)    # kw=0 (dw=-1)
    out = out + jnp.where(colw < W - 1, shift(col_acc[2], 1), 0.0)  # kw=2 (dw=+1)

    # ---- channel-wise gating + lane-dense store -----------------------------
    o_ref[0] = (out * gate).astype(o_ref.dtype)


def calayer_forward(x_nchw, w_du, b_du, w_c3):
    """CALayer forward.

    x_nchw: (N, C, H, W)
    w_du:   (C, C, 3, 3)  conv_du weight (PyTorch OIHW)
    b_du:   (C,)          conv_du bias
    w_c3:   (C, C, 3, 3)  c3 weight (no bias)
    """
    N, C, H, W = x_nchw.shape
    HW = H * W

    # Free reshapes only -- no transpose / pad / slice of x around the kernel.
    x_flat = x_nchw.reshape(N, C, HW)

    # conv_du applied to a (N, C, 1, 1) map with padding=1 only ever touches
    # the center tap of its 3x3 kernel.
    wc = w_du[:, :, 1, 1]                                   # (C_out, C_in)
    bc = b_du.reshape(C, 1)
    # c3 weight regrouped as (kw, C_out, kh*C_in): per horizontal tap, the 3
    # vertical taps stacked along the contraction dim.
    w3g = jnp.transpose(w_c3, (3, 0, 2, 1)).reshape(3, C, 3 * C)

    kernel = functools.partial(_calayer_kernel, H=H, W=W)

    # Rough VMEM budget: ~a dozen live f32 (C,HW) slabs + double-buffered
    # in/out blocks + weights.  Capped at v7x's 64 MiB physical VMEM.
    slab_f32 = 4 * C * HW
    vmem_est = (16 * slab_f32
                + 4 * x_flat.dtype.itemsize * C * HW
                + 4 * (10 * C * C + C))
    vmem_limit = int(min(64 << 20, max(32 << 20, 2 * vmem_est)))

    out_flat = pl.pallas_call(
        kernel,
        out_shape=jax.ShapeDtypeStruct((N, C, HW), x_nchw.dtype),
        grid_spec=pltpu.PrefetchScalarGridSpec(
            num_scalar_prefetch=0,
            grid=(N,),
            in_specs=[
                pl.BlockSpec((1, C, HW), lambda n: (n, 0, 0)),     # x, per batch
                pl.BlockSpec((C, C), lambda n: (0, 0)),            # conv_du center
                pl.BlockSpec((C, 1), lambda n: (0, 0)),            # conv_du bias
                pl.BlockSpec((3, C, 3 * C), lambda n: (0, 0, 0)),  # c3 taps
            ],
            out_specs=pl.BlockSpec((1, C, HW), lambda n: (n, 0, 0)),
        ),
        compiler_params=pltpu.CompilerParams(
            dimension_semantics=("parallel",),
            vmem_limit_bytes=vmem_limit),
    )(x_flat, wc, bc, w3g)

    return out_flat.reshape(N, C, H, W)


if __name__ == "__main__":
    key = jax.random.PRNGKey(0)
    k_x, k_w1, k_b1, k_w2 = jax.random.split(key, 4)

    N, C, H, W = 2, 4, 16, 16   # channel = 4
    x = jax.random.normal(k_x, (N, C, H, W), dtype=jnp.float32)
    w_du = jax.random.normal(k_w1, (C, C, 3, 3), dtype=jnp.float32) * 0.1
    b_du = jax.random.normal(k_b1, (C,), dtype=jnp.float32) * 0.1
    w_c3 = jax.random.normal(k_w2, (C, C, 3, 3), dtype=jnp.float32) * 0.1

    out = calayer_forward(x, w_du, b_du, w_c3)
    out = jax.block_until_ready(out)

    # ---- pure-JAX reference, faithful to the PyTorch CALayer forward -------
    mean = jnp.mean(x, axis=(2, 3), keepdims=True)
    var = jnp.mean((x - mean) ** 2, axis=(2, 3), keepdims=True)
    y0 = jnp.sqrt(var) + mean                              # stdv + avg_pool
    dn = ("NCHW", "OIHW", "NCHW")
    hp = jax.lax.Precision.HIGHEST
    gate = jax.nn.sigmoid(
        jax.lax.conv_general_dilated(y0, w_du, (1, 1), ((1, 1), (1, 1)),
                                     dimension_numbers=dn, precision=hp)
        + b_du[None, :, None, None])
    z = jax.lax.conv_general_dilated(x, w_c3, (1, 1), ((1, 1), (1, 1)),
                                     dimension_numbers=dn, precision=hp)
    ref = z * gate

    assert out.shape == ref.shape
    assert jnp.allclose(out, ref, atol=1e-4, rtol=1e-4), "mismatch vs reference"
    print("KERNEL_OK")
</pallas_src>

<mosaic_0001>
module attributes {stable_mosaic.version = 11 : i64} {
  func.func @_calayer_kernel(%arg0: i32, %arg1: memref<1x4x256xf32, #tpu.memory_space<vmem>>, %arg2: memref<4x4xf32, #tpu.memory_space<vmem>>, %arg3: memref<4x1xf32, #tpu.memory_space<vmem>>, %arg4: memref<3x4x12xf32, #tpu.memory_space<vmem>>, %arg5: memref<1x4x256xf32, #tpu.memory_space<vmem>>) attributes {dimension_semantics = [#tpu.dimension_semantics<parallel>], iteration_bounds = array<i64: 2>, scalar_prefetch = 0 : i64, scratch_operands = 0 : i64, tpu.core_type = #tpu.core_type<tc>, window_params = [{transform_indices = @transform_0, window_bounds = array<i64: 1, 4, 256>}, {pipeline_mode = #tpu.pipeline_mode<synchronous>, transform_indices = @transform_1, window_bounds = array<i64: 4, 4>}, {pipeline_mode = #tpu.pipeline_mode<synchronous>, transform_indices = @transform_2, window_bounds = array<i64: 4, 1>}, {pipeline_mode = #tpu.pipeline_mode<synchronous>, transform_indices = @transform_3, window_bounds = array<i64: 3, 4, 12>}, {transform_indices = @transform_4, window_bounds = array<i64: 1, 4, 256>}]} {
    %c0 = arith.constant 0 : index
    %c0_0 = arith.constant 0 : index
    %c0_1 = arith.constant 0 : index
    %0 = vector.load %arg1[%c0, %c0_0, %c0_1] : memref<1x4x256xf32, #tpu.memory_space<vmem>>, vector<1x4x256xf32>
    %1 = vector.shape_cast %0 : vector<1x4x256xf32> to vector<4x256xf32>
    %cst = arith.constant dense<0.000000e+00> : vector<4xf32>
    %2 = vector.multi_reduction <add>, %1, %cst [1] : vector<4x256xf32> to vector<4xf32>
    %3 = vector.shape_cast %2 : vector<4xf32> to vector<4x1xf32>
    %4 = arith.mulf %1, %1 : vector<4x256xf32>
    %cst_2 = arith.constant dense<0.000000e+00> : vector<4xf32>
    %5 = vector.multi_reduction <add>, %4, %cst_2 [1] : vector<4x256xf32> to vector<4xf32>
    %6 = vector.shape_cast %5 : vector<4xf32> to vector<4x1xf32>
    %cst_3 = arith.constant 3.906250e-03 : f32
    %7 = vector.broadcast %cst_3 : f32 to vector<4x1xf32>
    %8 = arith.mulf %3, %7 : vector<4x1xf32>
    %cst_4 = arith.constant 3.906250e-03 : f32
    %9 = vector.broadcast %cst_4 : f32 to vector<4x1xf32>
    %10 = arith.mulf %6, %9 : vector<4x1xf32>
    %11 = arith.mulf %8, %8 : vector<4x1xf32>
    %12 = arith.subf %10, %11 : vector<4x1xf32>
    %cst_5 = arith.constant 0.000000e+00 : f32
    %13 = vector.broadcast %cst_5 : f32 to vector<4x1xf32>
    %14 = arith.maximumf %12, %13 : vector<4x1xf32>
    %15 = math.sqrt %14 : vector<4x1xf32>
    %16 = arith.addf %15, %8 : vector<4x1xf32>
    %c0_6 = arith.constant 0 : index
    %c0_7 = arith.constant 0 : index
    %17 = vector.load %arg2[%c0_6, %c0_7] : memref<4x4xf32, #tpu.memory_space<vmem>>, vector<4x4xf32>
    %c0_8 = arith.constant 0 : index
    %c0_9 = arith.constant 0 : index
    %18 = vector.load %arg3[%c0_8, %c0_9] : memref<4x1xf32, #tpu.memory_space<vmem>>, vector<4x1xf32>
    %19 = vector.extract_strided_slice %17 {offsets = [0, 0], sizes = [4, 1], strides = [1, 1]} : vector<4x4xf32> to vector<4x1xf32>
    %20 = vector.extract_strided_slice %16 {offsets = [0, 0], sizes = [1, 1], strides = [1, 1]} : vector<4x1xf32> to vector<1x1xf32>
    %21 = vector.broadcast %20 : vector<1x1xf32> to vector<4x1xf32>
    %22 = arith.mulf %19, %21 : vector<4x1xf32>
    %23 = arith.addf %18, %22 : vector<4x1xf32>
    %24 = vector.extract_strided_slice %17 {offsets = [0, 1], sizes = [4, 1], strides = [1, 1]} : vector<4x4xf32> to vector<4x1xf32>
    %25 = vector.extract_strided_slice %16 {offsets = [1, 0], sizes = [1, 1], strides = [1, 1]} : vector<4x1xf32> to vector<1x1xf32>
    %26 = vector.broadcast %25 : vector<1x1xf32> to vector<4x1xf32>
    %27 = arith.mulf %24, %26 : vector<4x1xf32>
    %28 = arith.addf %23, %27 : vector<4x1xf32>
    %29 = vector.extract_strided_slice %17 {offsets = [0, 2], sizes = [4, 1], strides = [1, 1]} : vector<4x4xf32> to vector<4x1xf32>
    %30 = vector.extract_strided_slice %16 {offsets = [2, 0], sizes = [1, 1], strides = [1, 1]} : vector<4x1xf32> to vector<1x1xf32>
    %31 = vector.broadcast %30 : vector<1x1xf32> to vector<4x1xf32>
    %32 = arith.mulf %29, %31 : vector<4x1xf32>
    %33 = arith.addf %28, %32 : vector<4x1xf32>
    %34 = vector.extract_strided_slice %17 {offsets = [0, 3], sizes = [4, 1], strides = [1, 1]} : vector<4x4xf32> to vector<4x1xf32>
    %35 = vector.extract_strided_slice %16 {offsets = [3, 0], sizes = [1, 1], strides = [1, 1]} : vector<4x1xf32> to vector<1x1xf32>
    %36 = vector.broadcast %35 : vector<1x1xf32> to vector<4x1xf32>
    %37 = arith.mulf %34, %36 : vector<4x1xf32>
    %38 = arith.addf %33, %37 : vector<4x1xf32>
    %39 = arith.negf %38 : vector<4x1xf32>
    %40 = math.exp %39 : vector<4x1xf32>
    %cst_10 = arith.constant 1.000000e+00 : f32
    %41 = vector.broadcast %cst_10 : f32 to vector<4x1xf32>
    %42 = arith.addf %41, %40 : vector<4x1xf32>
    %43 = arith.divf %41, %42 : vector<4x1xf32>
    %44 = tpu.iota {dimensions = array<i32: 1>} : vector<4x256xi32>
    %c16_i32 = arith.constant 16 : i32
    %c0_i32 = arith.constant 0 : i32
    %45 = arith.cmpi eq, %c16_i32, %c0_i32 : i32
    %c1_i32 = arith.constant 1 : i32
    %46 = arith.select %45, %c1_i32, %c16_i32 : i32
    %47 = vector.broadcast %46 : i32 to vector<4x256xi32>
    %48 = arith.remsi %44, %47 : vector<4x256xi32>
    %c0_i32_11 = arith.constant 0 : i32
    %49 = vector.broadcast %c0_i32_11 : i32 to vector<4x256xi32>
    %50 = arith.cmpi ne, %48, %49 : vector<4x256xi32>
    %c0_i32_12 = arith.constant 0 : i32
    %51 = vector.broadcast %c0_i32_12 : i32 to vector<4x256xi32>
    %52 = arith.cmpi slt, %48, %51 : vector<4x256xi32>
    %c0_i32_13 = arith.constant 0 : i32
    %53 = arith.cmpi slt, %46, %c0_i32_13 : i32
    %54 = vector.broadcast %53 : i1 to vector<4x256xi1>
    %55 = vector.broadcast %54 : vector<4x256xi1> to vector<4x256xi1>
    %56 = arith.xori %52, %55 : vector<4x256xi1>
    %57 = arith.andi %56, %50 : vector<4x256xi1>
    %58 = vector.broadcast %46 : i32 to vector<4x256xi32>
    %59 = arith.addi %48, %58 : vector<4x256xi32>
    %60 = arith.select %57, %59, %48 : vector<4x256xi1>, vector<4x256xi32>
    %c16_i32_14 = arith.constant 16 : i32
    %61 = vector.broadcast %c16_i32_14 : i32 to vector<4x256xi32>
    %62 = arith.cmpi sge, %44, %61 : vector<4x256xi32>
    %c16_i32_15 = arith.constant 16 : i32
    %63 = tpu.dynamic_rotate %1 by %c16_i32_15 dim 1 : vector<4x256xf32>, i32 -> vector<4x256xf32>
    %cst_16 = arith.constant 0.000000e+00 : f32
    %64 = vector.broadcast %cst_16 : f32 to vector<4x256xf32>
    %65 = arith.select %62, %63, %64 : vector<4x256xi1>, vector<4x256xf32>
    %c240_i32 = arith.constant 240 : i32
    %66 = vector.broadcast %c240_i32 : i32 to vector<4x256xi32>
    %67 = arith.cmpi slt, %44, %66 : vector<4x256xi32>
    %c240_i32_17 = arith.constant 240 : i32
    %68 = tpu.dynamic_rotate %1 by %c240_i32_17 dim 1 : vector<4x256xf32>, i32 -> vector<4x256xf32>
    %cst_18 = arith.constant 0.000000e+00 : f32
    %69 = vector.broadcast %cst_18 : f32 to vector<4x256xf32>
    %70 = arith.select %67, %68, %69 : vector<4x256xi1>, vector<4x256xf32>
    %c0_19 = arith.constant 0 : index
    %c0_20 = arith.constant 0 : index
    %c0_21 = arith.constant 0 : index
    %71 = vector.load %arg4[%c0_19, %c0_20, %c0_21] : memref<3x4x12xf32, #tpu.memory_space<vmem>>, vector<1x4x12xf32>
    %72 = vector.shape_cast %71 : vector<1x4x12xf32> to vector<4x12xf32>
    %73 = vector.extract_strided_slice %72 {offsets = [0, 0], sizes = [4, 1], strides = [1, 1]} : vector<4x12xf32> to vector<4x1xf32>
    %74 = vector.extract_strided_slice %65 {offsets = [0, 0], sizes = [1, 256], strides = [1, 1]} : vector<4x256xf32> to vector<1x256xf32>
    %75 = vector.broadcast %73 : vector<4x1xf32> to vector<4x256xf32>
    %76 = vector.broadcast %74 : vector<1x256xf32> to vector<4x256xf32>
    %77 = arith.mulf %75, %76 : vector<4x256xf32>
    %78 = vector.extract_strided_slice %72 {offsets = [0, 1], sizes = [4, 1], strides = [1, 1]} : vector<4x12xf32> to vector<4x1xf32>
    %79 = vector.extract_strided_slice %65 {offsets = [1, 0], sizes = [1, 256], strides = [1, 1]} : vector<4x256xf32> to vector<1x256xf32>
    %80 = vector.broadcast %78 : vector<4x1xf32> to vector<4x256xf32>
    %81 = vector.broadcast %79 : vector<1x256xf32> to vector<4x256xf32>
    %82 = arith.mulf %80, %81 : vector<4x256xf32>
    %83 = arith.addf %77, %82 : vector<4x256xf32>
    %84 = vector.extract_strided_slice %72 {offsets = [0, 2], sizes = [4, 1], strides = [1, 1]} : vector<4x12xf32> to vector<4x1xf32>
    %85 = vector.extract_strided_slice %65 {offsets = [2, 0], sizes = [1, 256], strides = [1, 1]} : vector<4x256xf32> to vector<1x256xf32>
    %86 = vector.broadcast %84 : vector<4x1xf32> to vector<4x256xf32>
    %87 = vector.broadcast %85 : vector<1x256xf32> to vector<4x256xf32>
    %88 = arith.mulf %86, %87 : vector<4x256xf32>
    %89 = arith.addf %83, %88 : vector<4x256xf32>
    %90 = vector.extract_strided_slice %72 {offsets = [0, 3], sizes = [4, 1], strides = [1, 1]} : vector<4x12xf32> to vector<4x1xf32>
    %91 = vector.extract_strided_slice %65 {offsets = [3, 0], sizes = [1, 256], strides = [1, 1]} : vector<4x256xf32> to vector<1x256xf32>
    %92 = vector.broadcast %90 : vector<4x1xf32> to vector<4x256xf32>
    %93 = vector.broadcast %91 : vector<1x256xf32> to vector<4x256xf32>
    %94 = arith.mulf %92, %93 : vector<4x256xf32>
    %95 = arith.addf %89, %94 : vector<4x256xf32>
    %96 = vector.extract_strided_slice %72 {offsets = [0, 4], sizes = [4, 1], strides = [1, 1]} : vector<4x12xf32> to vector<4x1xf32>
    %97 = vector.extract_strided_slice %1 {offsets = [0, 0], sizes = [1, 256], strides = [1, 1]} : vector<4x256xf32> to vector<1x256xf32>
    %98 = vector.broadcast %96 : vector<4x1xf32> to vector<4x256xf32>
    %99 = vector.broadcast %97 : vector<1x256xf32> to vector<4x256xf32>
    %100 = arith.mulf %98, %99 : vector<4x256xf32>
    %101 = arith.addf %95, %100 : vector<4x256xf32>
    %102 = vector.extract_strided_slice %72 {offsets = [0, 5], sizes = [4, 1], strides = [1, 1]} : vector<4x12xf32> to vector<4x1xf32>
    %103 = vector.extract_strided_slice %1 {offsets = [1, 0], sizes = [1, 256], strides = [1, 1]} : vector<4x256xf32> to vector<1x256xf32>
    %104 = vector.broadcast %102 : vector<4x1xf32> to vector<4x256xf32>
    %105 = vector.broadcast %103 : vector<1x256xf32> to vector<4x256xf32>
    %106 = arith.mulf %104, %105 : vector<4x256xf32>
    %107 = arith.addf %101, %106 : vector<4x256xf32>
    %108 = vector.extract_strided_slice %72 {offsets = [0, 6], sizes = [4, 1], strides = [1, 1]} : vector<4x12xf32> to vector<4x1xf32>
    %109 = vector.extract_strided_slice %1 {offsets = [2, 0], sizes = [1, 256], strides = [1, 1]} : vector<4x256xf32> to vector<1x256xf32>
    %110 = vector.broadcast %108 : vector<4x1xf32> to vector<4x256xf32>
    %111 = vector.broadcast %109 : vector<1x256xf32> to vector<4x256xf32>
    %112 = arith.mulf %110, %111 : vector<4x256xf32>
    %113 = arith.addf %107, %112 : vector<4x256xf32>
    %114 = vector.extract_strided_slice %72 {offsets = [0, 7], sizes = [4, 1], strides = [1, 1]} : vector<4x12xf32> to vector<4x1xf32>
    %115 = vector.extract_strided_slice %1 {offsets = [3, 0], sizes = [1, 256], strides = [1, 1]} : vector<4x256xf32> to vector<1x256xf32>
    %116 = vector.broadcast %114 : vector<4x1xf32> to vector<4x256xf32>
    %117 = vector.broadcast %115 : vector<1x256xf32> to vector<4x256xf32>
    %118 = arith.mulf %116, %117 : vector<4x256xf32>
    %119 = arith.addf %113, %118 : vector<4x256xf32>
    %120 = vector.extract_strided_slice %72 {offsets = [0, 8], sizes = [4, 1], strides = [1, 1]} : vector<4x12xf32> to vector<4x1xf32>
    %121 = vector.extract_strided_slice %70 {offsets = [0, 0], sizes = [1, 256], strides = [1, 1]} : vector<4x256xf32> to vector<1x256xf32>
    %122 = vector.broadcast %120 : vector<4x1xf32> to vector<4x256xf32>
    %123 = vector.broadcast %121 : vector<1x256xf32> to vector<4x256xf32>
    %124 = arith.mulf %122, %123 : vector<4x256xf32>
    %125 = arith.addf %119, %124 : vector<4x256xf32>
    %126 = vector.extract_strided_slice %72 {offsets = [0, 9], sizes = [4, 1], strides = [1, 1]} : vector<4x12xf32> to vector<4x1xf32>
    %127 = vector.extract_strided_slice %70 {offsets = [1, 0], sizes = [1, 256], strides = [1, 1]} : vector<4x256xf32> to vector<1x256xf32>
    %128 = vector.broadcast %126 : vector<4x1xf32> to vector<4x256xf32>
    %129 = vector.broadcast %127 : vector<1x256xf32> to vector<4x256xf32>
    %130 = arith.mulf %128, %129 : vector<4x256xf32>
    %131 = arith.addf %125, %130 : vector<4x256xf32>
    %132 = vector.extract_strided_slice %72 {offsets = [0, 10], sizes = [4, 1], strides = [1, 1]} : vector<4x12xf32> to vector<4x1xf32>
    %133 = vector.extract_strided_slice %70 {offsets = [2, 0], sizes = [1, 256], strides = [1, 1]} : vector<4x256xf32> to vector<1x256xf32>
    %134 = vector.broadcast %132 : vector<4x1xf32> to vector<4x256xf32>
    %135 = vector.broadcast %133 : vector<1x256xf32> to vector<4x256xf32>
    %136 = arith.mulf %134, %135 : vector<4x256xf32>
    %137 = arith.addf %131, %136 : vector<4x256xf32>
    %138 = vector.extract_strided_slice %72 {offsets = [0, 11], sizes = [4, 1], strides = [1, 1]} : vector<4x12xf32> to vector<4x1xf32>
    %139 = vector.extract_strided_slice %70 {offsets = [3, 0], sizes = [1, 256], strides = [1, 1]} : vector<4x256xf32> to vector<1x256xf32>
    %140 = vector.broadcast %138 : vector<4x1xf32> to vector<4x256xf32>
    %141 = vector.broadcast %139 : vector<1x256xf32> to vector<4x256xf32>
    %142 = arith.mulf %140, %141 : vector<4x256xf32>
    %143 = arith.addf %137, %142 : vector<4x256xf32>
    %c1 = arith.constant 1 : index
    %c0_22 = arith.constant 0 : index
    %c0_23 = arith.constant 0 : index
    %144 = vector.load %arg4[%c1, %c0_22, %c0_23] : memref<3x4x12xf32, #tpu.memory_space<vmem>>, vector<1x4x12xf32>
    %145 = vector.shape_cast %144 : vector<1x4x12xf32> to vector<4x12xf32>
    %146 = vector.extract_strided_slice %145 {offsets = [0, 0], sizes = [4, 1], strides = [1, 1]} : vector<4x12xf32> to vector<4x1xf32>
    %147 = vector.extract_strided_slice %65 {offsets = [0, 0], sizes = [1, 256], strides = [1, 1]} : vector<4x256xf32> to vector<1x256xf32>
    %148 = vector.broadcast %146 : vector<4x1xf32> to vector<4x256xf32>
    %149 = vector.broadcast %147 : vector<1x256xf32> to vector<4x256xf32>
    %150 = arith.mulf %148, %149 : vector<4x256xf32>
    %151 = vector.extract_strided_slice %145 {offsets = [0, 1], sizes = [4, 1], strides = [1, 1]} : vector<4x12xf32> to vector<4x1xf32>
    %152 = vector.extract_strided_slice %65 {offsets = [1, 0], sizes = [1, 256], strides = [1, 1]} : vector<4x256xf32> to vector<1x256xf32>
    %153 = vector.broadcast %151 : vector<4x1xf32> to vector<4x256xf32>
    %154 = vector.broadcast %152 : vector<1x256xf32> to vector<4x256xf32>
    %155 = arith.mulf %153, %154 : vector<4x256xf32>
    %156 = arith.addf %150, %155 : vector<4x256xf32>
    %157 = vector.extract_strided_slice %145 {offsets = [0, 2], sizes = [4, 1], strides = [1, 1]} : vector<4x12xf32> to vector<4x1xf32>
    %158 = vector.extract_strided_slice %65 {offsets = [2, 0], sizes = [1, 256], strides = [1, 1]} : vector<4x256xf32> to vector<1x256xf32>
    %159 = vector.broadcast %157 : vector<4x1xf32> to vector<4x256xf32>
    %160 = vector.broadcast %158 : vector<1x256xf32> to vector<4x256xf32>
    %161 = arith.mulf %159, %160 : vector<4x256xf32>
    %162 = arith.addf %156, %161 : vector<4x256xf32>
    %163 = vector.extract_strided_slice %145 {offsets = [0, 3], sizes = [4, 1], strides = [1, 1]} : vector<4x12xf32> to vector<4x1xf32>
    %164 = vector.extract_strided_slice %65 {offsets = [3, 0], sizes = [1, 256], strides = [1, 1]} : vector<4x256xf32> to vector<1x256xf32>
    %165 = vector.broadcast %163 : vector<4x1xf32> to vector<4x256xf32>
    %166 = vector.broadcast %164 : vector<1x256xf32> to vector<4x256xf32>
    %167 = arith.mulf %165, %166 : vector<4x256xf32>
    %168 = arith.addf %162, %167 : vector<4x256xf32>
    %169 = vector.extract_strided_slice %145 {offsets = [0, 4], sizes = [4, 1], strides = [1, 1]} : vector<4x12xf32> to vector<4x1xf32>
    %170 = vector.extract_strided_slice %1 {offsets = [0, 0], sizes = [1, 256], strides = [1, 1]} : vector<4x256xf32> to vector<1x256xf32>
    %171 = vector.broadcast %169 : vector<4x1xf32> to vector<4x256xf32>
    %172 = vector.broadcast %170 : vector<1x256xf32> to vector<4x256xf32>
    %173 = arith.mulf %171, %172 : vector<4x256xf32>
    %174 = arith.addf %168, %173 : vector<4x256xf32>
    %175 = vector.extract_strided_slice %145 {offsets = [0, 5], sizes = [4, 1], strides = [1, 1]} : vector<4x12xf32> to vector<4x1xf32>
    %176 = vector.extract_strided_slice %1 {offsets = [1, 0], sizes = [1, 256], strides = [1, 1]} : vector<4x256xf32> to vector<1x256xf32>
    %177 = vector.broadcast %175 : vector<4x1xf32> to vector<4x256xf32>
    %178 = vector.broadcast %176 : vector<1x256xf32> to vector<4x256xf32>
    %179 = arith.mulf %177, %178 : vector<4x256xf32>
    %180 = arith.addf %174, %179 : vector<4x256xf32>
    %181 = vector.extract_strided_slice %145 {offsets = [0, 6], sizes = [4, 1], strides = [1, 1]} : vector<4x12xf32> to vector<4x1xf32>
    %182 = vector.extract_strided_slice %1 {offsets = [2, 0], sizes = [1, 256], strides = [1, 1]} : vector<4x256xf32> to vector<1x256xf32>
    %183 = vector.broadcast %181 : vector<4x1xf32> to vector<4x256xf32>
    %184 = vector.broadcast %182 : vector<1x256xf32> to vector<4x256xf32>
    %185 = arith.mulf %183, %184 : vector<4x256xf32>
    %186 = arith.addf %180, %185 : vector<4x256xf32>
    %187 = vector.extract_strided_slice %145 {offsets = [0, 7], sizes = [4, 1], strides = [1, 1]} : vector<4x12xf32> to vector<4x1xf32>
    %188 = vector.extract_strided_slice %1 {offsets = [3, 0], sizes = [1, 256], strides = [1, 1]} : vector<4x256xf32> to vector<1x256xf32>
    %189 = vector.broadcast %187 : vector<4x1xf32> to vector<4x256xf32>
    %190 = vector.broadcast %188 : vector<1x256xf32> to vector<4x256xf32>
    %191 = arith.mulf %189, %190 : vector<4x256xf32>
    %192 = arith.addf %186, %191 : vector<4x256xf32>
    %193 = vector.extract_strided_slice %145 {offsets = [0, 8], sizes = [4, 1], strides = [1, 1]} : vector<4x12xf32> to vector<4x1xf32>
    %194 = vector.extract_strided_slice %70 {offsets = [0, 0], sizes = [1, 256], strides = [1, 1]} : vector<4x256xf32> to vector<1x256xf32>
    %195 = vector.broadcast %193 : vector<4x1xf32> to vector<4x256xf32>
    %196 = vector.broadcast %194 : vector<1x256xf32> to vector<4x256xf32>
    %197 = arith.mulf %195, %196 : vector<4x256xf32>
    %198 = arith.addf %192, %197 : vector<4x256xf32>
    %199 = vector.extract_strided_slice %145 {offsets = [0, 9], sizes = [4, 1], strides = [1, 1]} : vector<4x12xf32> to vector<4x1xf32>
    %200 = vector.extract_strided_slice %70 {offsets = [1, 0], sizes = [1, 256], strides = [1, 1]} : vector<4x256xf32> to vector<1x256xf32>
    %201 = vector.broadcast %199 : vector<4x1xf32> to vector<4x256xf32>
    %202 = vector.broadcast %200 : vector<1x256xf32> to vector<4x256xf32>
    %203 = arith.mulf %201, %202 : vector<4x256xf32>
    %204 = arith.addf %198, %203 : vector<4x256xf32>
    %205 = vector.extract_strided_slice %145 {offsets = [0, 10], sizes = [4, 1], strides = [1, 1]} : vector<4x12xf32> to vector<4x1xf32>
    %206 = vector.extract_strided_slice %70 {offsets = [2, 0], sizes = [1, 256], strides = [1, 1]} : vector<4x256xf32> to vector<1x256xf32>
    %207 = vector.broadcast %205 : vector<4x1xf32> to vector<4x256xf32>
    %208 = vector.broadcast %206 : vector<1x256xf32> to vector<4x256xf32>
    %209 = arith.mulf %207, %208 : vector<4x256xf32>
    %210 = arith.addf %204, %209 : vector<4x256xf32>
    %211 = vector.extract_strided_slice %145 {offsets = [0, 11], sizes = [4, 1], strides = [1, 1]} : vector<4x12xf32> to vector<4x1xf32>
    %212 = vector.extract_strided_slice %70 {offsets = [3, 0], sizes = [1, 256], strides = [1, 1]} : vector<4x256xf32> to vector<1x256xf32>
    %213 = vector.broadcast %211 : vector<4x1xf32> to vector<4x256xf32>
    %214 = vector.broadcast %212 : vector<1x256xf32> to vector<4x256xf32>
    %215 = arith.mulf %213, %214 : vector<4x256xf32>
    %216 = arith.addf %210, %215 : vector<4x256xf32>
    %c2 = arith.constant 2 : index
    %c0_24 = arith.constant 0 : index
    %c0_25 = arith.constant 0 : index
    %217 = vector.load %arg4[%c2, %c0_24, %c0_25] : memref<3x4x12xf32, #tpu.memory_space<vmem>>, vector<1x4x12xf32>
    %218 = vector.shape_cast %217 : vector<1x4x12xf32> to vector<4x12xf32>
    %219 = vector.extract_strided_slice %218 {offsets = [0, 0], sizes = [4, 1], strides = [1, 1]} : vector<4x12xf32> to vector<4x1xf32>
    %220 = vector.extract_strided_slice %65 {offsets = [0, 0], sizes = [1, 256], strides = [1, 1]} : vector<4x256xf32> to vector<1x256xf32>
    %221 = vector.broadcast %219 : vector<4x1xf32> to vector<4x256xf32>
    %222 = vector.broadcast %220 : vector<1x256xf32> to vector<4x256xf32>
    %223 = arith.mulf %221, %222 : vector<4x256xf32>
    %224 = vector.extract_strided_slice %218 {offsets = [0, 1], sizes = [4, 1], strides = [1, 1]} : vector<4x12xf32> to vector<4x1xf32>
    %225 = vector.extract_strided_slice %65 {offsets = [1, 0], sizes = [1, 256], strides = [1, 1]} : vector<4x256xf32> to vector<1x256xf32>
    %226 = vector.broadcast %224 : vector<4x1xf32> to vector<4x256xf32>
    %227 = vector.broadcast %225 : vector<1x256xf32> to vector<4x256xf32>
    %228 = arith.mulf %226, %227 : vector<4x256xf32>
    %229 = arith.addf %223, %228 : vector<4x256xf32>
    %230 = vector.extract_strided_slice %218 {offsets = [0, 2], sizes = [4, 1], strides = [1, 1]} : vector<4x12xf32> to vector<4x1xf32>
    %231 = vector.extract_strided_slice %65 {offsets = [2, 0], sizes = [1, 256], strides = [1, 1]} : vector<4x256xf32> to vector<1x256xf32>
    %232 = vector.broadcast %230 : vector<4x1xf32> to vector<4x256xf32>
    %233 = vector.broadcast %231 : vector<1x256xf32> to vector<4x256xf32>
    %234 = arith.mulf %232, %233 : vector<4x256xf32>
    %235 = arith.addf %229, %234 : vector<4x256xf32>
    %236 = vector.extract_strided_slice %218 {offsets = [0, 3], sizes = [4, 1], strides = [1, 1]} : vector<4x12xf32> to vector<4x1xf32>
    %237 = vector.extract_strided_slice %65 {offsets = [3, 0], sizes = [1, 256], strides = [1, 1]} : vector<4x256xf32> to vector<1x256xf32>
    %238 = vector.broadcast %236 : vector<4x1xf32> to vector<4x256xf32>
    %239 = vector.broadcast %237 : vector<1x256xf32> to vector<4x256xf32>
    %240 = arith.mulf %238, %239 : vector<4x256xf32>
    %241 = arith.addf %235, %240 : vector<4x256xf32>
    %242 = vector.extract_strided_slice %218 {offsets = [0, 4], sizes = [4, 1], strides = [1, 1]} : vector<4x12xf32> to vector<4x1xf32>
    %243 = vector.extract_strided_slice %1 {offsets = [0, 0], sizes = [1, 256], strides = [1, 1]} : vector<4x256xf32> to vector<1x256xf32>
    %244 = vector.broadcast %242 : vector<4x1xf32> to vector<4x256xf32>
    %245 = vector.broadcast %243 : vector<1x256xf32> to vector<4x256xf32>
    %246 = arith.mulf %244, %245 : vector<4x256xf32>
    %247 = arith.addf %241, %246 : vector<4x256xf32>
    %248 = vector.extract_strided_slice %218 {offsets = [0, 5], sizes = [4, 1], strides = [1, 1]} : vector<4x12xf32> to vector<4x1xf32>
    %249 = vector.extract_strided_slice %1 {offsets = [1, 0], sizes = [1, 256], strides = [1, 1]} : vector<4x256xf32> to vector<1x256xf32>
    %250 = vector.broadcast %248 : vector<4x1xf32> to vector<4x256xf32>
    %251 = vector.broadcast %249 : vector<1x256xf32> to vector<4x256xf32>
    %252 = arith.mulf %250, %251 : vector<4x256xf32>
    %253 = arith.addf %247, %252 : vector<4x256xf32>
    %254 = vector.extract_strided_slice %218 {offsets = [0, 6], sizes = [4, 1], strides = [1, 1]} : vector<4x12xf32> to vector<4x1xf32>
    %255 = vector.extract_strided_slice %1 {offsets = [2, 0], sizes = [1, 256], strides = [1, 1]} : vector<4x256xf32> to vector<1x256xf32>
    %256 = vector.broadcast %254 : vector<4x1xf32> to vector<4x256xf32>
    %257 = vector.broadcast %255 : vector<1x256xf32> to vector<4x256xf32>
    %258 = arith.mulf %256, %257 : vector<4x256xf32>
    %259 = arith.addf %253, %258 : vector<4x256xf32>
    %260 = vector.extract_strided_slice %218 {offsets = [0, 7], sizes = [4, 1], strides = [1, 1]} : vector<4x12xf32> to vector<4x1xf32>
    %261 = vector.extract_strided_slice %1 {offsets = [3, 0], sizes = [1, 256], strides = [1, 1]} : vector<4x256xf32> to vector<1x256xf32>
    %262 = vector.broadcast %260 : vector<4x1xf32> to vector<4x256xf32>
    %263 = vector.broadcast %261 : vector<1x256xf32> to vector<4x256xf32>
    %264 = arith.mulf %262, %263 : vector<4x256xf32>
    %265 = arith.addf %259, %264 : vector<4x256xf32>
    %266 = vector.extract_strided_slice %218 {offsets = [0, 8], sizes = [4, 1], strides = [1, 1]} : vector<4x12xf32> to vector<4x1xf32>
    %267 = vector.extract_strided_slice %70 {offsets = [0, 0], sizes = [1, 256], strides = [1, 1]} : vector<4x256xf32> to vector<1x256xf32>
    %268 = vector.broadcast %266 : vector<4x1xf32> to vector<4x256xf32>
    %269 = vector.broadcast %267 : vector<1x256xf32> to vector<4x256xf32>
    %270 = arith.mulf %268, %269 : vector<4x256xf32>
    %271 = arith.addf %265, %270 : vector<4x256xf32>
    %272 = vector.extract_strided_slice %218 {offsets = [0, 9], sizes = [4, 1], strides = [1, 1]} : vector<4x12xf32> to vector<4x1xf32>
    %273 = vector.extract_strided_slice %70 {offsets = [1, 0], sizes = [1, 256], strides = [1, 1]} : vector<4x256xf32> to vector<1x256xf32>
    %274 = vector.broadcast %272 : vector<4x1xf32> to vector<4x256xf32>
    %275 = vector.broadcast %273 : vector<1x256xf32> to vector<4x256xf32>
    %276 = arith.mulf %274, %275 : vector<4x256xf32>
    %277 = arith.addf %271, %276 : vector<4x256xf32>
    %278 = vector.extract_strided_slice %218 {offsets = [0, 10], sizes = [4, 1], strides = [1, 1]} : vector<4x12xf32> to vector<4x1xf32>
    %279 = vector.extract_strided_slice %70 {offsets = [2, 0], sizes = [1, 256], strides = [1, 1]} : vector<4x256xf32> to vector<1x256xf32>
    %280 = vector.broadcast %278 : vector<4x1xf32> to vector<4x256xf32>
    %281 = vector.broadcast %279 : vector<1x256xf32> to vector<4x256xf32>
    %282 = arith.mulf %280, %281 : vector<4x256xf32>
    %283 = arith.addf %277, %282 : vector<4x256xf32>
    %284 = vector.extract_strided_slice %218 {offsets = [0, 11], sizes = [4, 1], strides = [1, 1]} : vector<4x12xf32> to vector<4x1xf32>
    %285 = vector.extract_strided_slice %70 {offsets = [3, 0], sizes = [1, 256], strides = [1, 1]} : vector<4x256xf32> to vector<1x256xf32>
    %286 = vector.broadcast %284 : vector<4x1xf32> to vector<4x256xf32>
    %287 = vector.broadcast %285 : vector<1x256xf32> to vector<4x256xf32>
    %288 = arith.mulf %286, %287 : vector<4x256xf32>
    %289 = arith.addf %283, %288 : vector<4x256xf32>
    %c1_i32_26 = arith.constant 1 : i32
    %290 = vector.broadcast %c1_i32_26 : i32 to vector<4x256xi32>
    %291 = arith.cmpi sge, %60, %290 : vector<4x256xi32>
    %c1_i32_27 = arith.constant 1 : i32
    %292 = tpu.dynamic_rotate %143 by %c1_i32_27 dim 1 : vector<4x256xf32>, i32 -> vector<4x256xf32>
    %cst_28 = arith.constant 0.000000e+00 : f32
    %293 = vector.broadcast %cst_28 : f32 to vector<4x256xf32>
    %294 = arith.select %291, %292, %293 : vector<4x256xi1>, vector<4x256xf32>
    %295 = arith.addf %216, %294 : vector<4x256xf32>
    %c15_i32 = arith.constant 15 : i32
    %296 = vector.broadcast %c15_i32 : i32 to vector<4x256xi32>
    %297 = arith.cmpi slt, %60, %296 : vector<4x256xi32>
    %c255_i32 = arith.constant 255 : i32
    %298 = tpu.dynamic_rotate %289 by %c255_i32 dim 1 : vector<4x256xf32>, i32 -> vector<4x256xf32>
    %cst_29 = arith.constant 0.000000e+00 : f32
    %299 = vector.broadcast %cst_29 : f32 to vector<4x256xf32>
    %300 = arith.select %297, %298, %299 : vector<4x256xi1>, vector<4x256xf32>
    %301 = arith.addf %295, %300 : vector<4x256xf32>
    %302 = vector.broadcast %43 : vector<4x1xf32> to vector<4x256xf32>
    %303 = arith.mulf %301, %302 : vector<4x256xf32>
    %c0_30 = arith.constant 0 : index
    %c0_31 = arith.constant 0 : index
    %c0_32 = arith.constant 0 : index
    %304 = vector.load %arg5[%c0_30, %c0_31, %c0_32] : memref<1x4x256xf32, #tpu.memory_space<vmem>>, vector<1x4x256xf32>
    %305 = vector.shape_cast %304 : vector<1x4x256xf32> to vector<4x256xf32>
    %306 = vector.shape_cast %303 : vector<4x256xf32> to vector<1x4x256xf32>
    tpu.vector_store %arg5[%c0_30, %c0_31, %c0_32], %306 {strides = array<i32>} : memref<1x4x256xf32, #tpu.memory_space<vmem>>, vector<1x4x256xf32>,
    return
  }
  func.func @transform_0(%arg0: i32) -> (i32, i32, i32) {
    %c0_i32 = arith.constant 0 : i32
    %c0_i32_0 = arith.constant 0 : i32
    %c0_i32_1 = arith.constant 0 : i32
    return %arg0, %c0_i32, %c0_i32_0 : i32, i32, i32
  }
  func.func @transform_1(%arg0: i32) -> (i32, i32) {
    %c0_i32 = arith.constant 0 : i32
    %c0_i32_0 = arith.constant 0 : i32
    %c0_i32_1 = arith.constant 0 : i32
    return %c0_i32, %c0_i32_0 : i32, i32
  }
  func.func @transform_2(%arg0: i32) -> (i32, i32) {
    %c0_i32 = arith.constant 0 : i32
    %c0_i32_0 = arith.constant 0 : i32
    %c0_i32_1 = arith.constant 0 : i32
    return %c0_i32, %c0_i32_0 : i32, i32
  }
  func.func @transform_3(%arg0: i32) -> (i32, i32, i32) {
    %c0_i32 = arith.constant 0 : i32
    %c0_i32_0 = arith.constant 0 : i32
    %c0_i32_1 = arith.constant 0 : i32
    %c0_i32_2 = arith.constant 0 : i32
    return %c0_i32, %c0_i32_0, %c0_i32_1 : i32, i32, i32
  }
  func.func @transform_4(%arg0: i32) -> (i32, i32, i32) {
    %c0_i32 = arith.constant 0 : i32
    %c0_i32_0 = arith.constant 0 : i32
    %c0_i32_1 = arith.constant 0 : i32
    return %arg0, %c0_i32, %c0_i32_0 : i32, i32, i32
  }
}

</mosaic_0001>

<bundles_post_ra>
// kernel: tpu_custom_call.1
= control target key start
LH: loop header
LB: loop body
LE: loop exit
PB: predicated region body
PF: predicated region fallthrough
CT: control target
= control target key end

     0   :  { %9 = vsyncpa [#allocation3], 0  ;;  %s1658_s0 = inlined_call_operand.hbm [shape: f32[2,4,256], index: 0, kind: input, shape index: {}]   ;;  %s1659_s1 = inlined_call_operand.vmem [shape: f32[4,4], index: 1, kind: input, shape index: {}]   ;;  %s1660_s2 = inlined_call_operand.vmem [shape: f32[4,1], index: 2, kind: input, shape index: {}]   ;;  %s1661_s3 = inlined_call_operand.vmem [shape: f32[3,4,12], index: 3, kind: input, shape index: {}]   ;;  %s1662_s4 = inlined_call_operand.hbm [shape: f32[2,4,256], index: 4, kind: output, shape index: {}]  }
   0x1   :  { %11 = vsyncpa [#allocation3 + $0x1], 0 }
   0x2   :  { %12 = vsyncpa [#allocation4], 0 }
   0x3   :  { %14 = vsyncpa [#allocation4 + $0x1], 0  ;;  %s1155_s15 = smov 0   ;;  %s1157_s16 = smov 0  }
   0x4   :  { %s1159_s17 = smov 0   ;;  %s1161_s18 = smov 0  }
   0x5 LB: > { %s1176_s19 = sadd.s32 4294967295, %s1108_s18   ;;  %s888_s20 = sadd.s32 4294967294, %s1108_s18   ;;  %s1108_s18 = sphi %s1161_s18, %s1677_s18   ;;  %s1104_s17 = sphi %s1159_s17, %s1676_s17   ;;  %s1100_s16 = sphi %s1157_s16, %s1675_s16   ;;  %s1096_s15 = sphi %s1155_s15, %s1674_s15  }
   0x6   : > { %s1180_s21 = sadd.s32 1, %s1108_s18   ;;  %s27_s22 = sadd.s32 1, %s1104_s17 }
   0x7   : > { %s24_s23 = ssub.s32 %s1108_s18, %s1180_s21  ;;  %p34_p0 = scmp.ne.s32.totalorder %s1104_s17, %s1100_s16 }
   0x8   : > { %p25_p1 = scmp.eq.s32.totalorder %s24_s23, 0  ;;  %p35_p2 = scmp.eq.s32.totalorder %s1108_s18, 0 }
   0x9   : > { %p40_p3 = scmp.ne.s32.totalorder %s1100_s16, %s1096_s15  ;;  %p41_p4 = scmp.eq.s32.totalorder %s1176_s19, 0 }
   0xa   : > { %s1192_s24 = scalar_select %p25_p1, %s1104_s17, %s27_s22  }
   0xb   : > { %p1194_p5 = por %p35_p2, %p34_p0  ;;  %p1198_p6 = por %p41_p4, %p40_p3 }
   0xc   : > { %p127_p7 = scmp.eq.s32.totalorder %s1176_s19, 1  ;;  %p133_p8 = scmp.eq.s32.totalorder %s888_s20, 1 }
   0xd   : > { %p919_p10 = scmp.lt.s32.totalorder %s1108_s18, 2  ;;  %s162_s29 = sand.u32 1, %s1104_s17  }
   0xe   : > { %p1205_p11 = por %p127_p7, %p34_p0  ;;  %p1209_p12 = por %p133_p8, %p40_p3 }
   0xf   : > { %s905_s30 = sshll.u32 %s1108_s18, 7  ;;  %s891_s5 = sshll.u32 %s162_s29, 3 }
  0x10   : > { %s1666_s27 = scalar_select %p1205_p11, 1, 0 }
  0x11   : > { %s1667_s28 = scalar_select %p1209_p12, 1, 0 }
  0x12   : > { %s1218_s8 = scalar_lea.hbm %s1658_s0, %s905_s30  ;;  %s166_s9 = scalar_lea.vmem [#allocation2], %s891_s5 }
  0x13   : > { %s174_s10 = sshll.u32 %s166_s9, 4  ;;  %p1222_p13 = pnand %p919_p10, %p1194_p5  ;;  %s1226_s10 = int_to_ptr.vmem [resolvable:$true] %s174_s10 }
  0x14   : > { %s163_s12 = scalar_lea.sflag [#allocation3], %s162_s29  ;;  %s1012_s13 = scalar_lea.hbm %s1218_s8, 128 }
  0x15   : > { %p1013_p2 = scmp.ne.s32.totalorder %s1218_s8, %s1012_s13  ;;  %p1014_p3 = pneg %p1222_p13 }
  0x16   : > { %s1017_s22 = scalar_lea.hbm %s1658_s0, 256  ;;  %p1018_p5 = scmp.lt.u32.totalorder %s1218_s8, %s1658_s0 }
  0x17   : > { %p1015_p4 = pnand %p1014_p3, %p1013_p2  ;;  %p1019_p8 = scmp.lt.u32.totalorder %s1017_s22, %s1012_s13 }
  0x18   : > { %p1021_p9 = scmp.lt.u32.totalorder %s1012_s13, %s1218_s8 }
  0x19   : > { %p1016_p7 = pneg %p1015_p4  ;;  %p1020_p10 = por %p1019_p8, %p1018_p5 }
  0x1b   : > { %p1022_p0 = por %p1021_p9, %p1020_p10 }
  0x1d   : > { %p1023_p1 = pnand %p1022_p0, %p1016_p7 }
  0x1f   : > { %1026 = shalt.err (!%p1023_p1)
}
  0x20   : > { %s1027_s29 = scalar_lea.vmem %s1226_s10, 128  ;;  %s1110_s30 = smov [#allocation2]  }
  0x21   : > { %p1028_p2 = scmp.ne.s32.totalorder %s1226_s10, %s1027_s29  ;;  %s1032_s5 = sshll.u32 %s1110_s30, 4  ;;  %s1033_s5 = int_to_ptr.vmem [resolvable:$false] %s1032_s5 }
  0x22   : > { %s1034_s6 = scalar_lea.vmem %s1033_s5, 256  ;;  %p1035_p11 = scmp.lt.s32.totalorder %s1226_s10, %s1033_s5 }
  0x23   : > { %p1030_p4 = pnand %p1028_p2, %p1014_p3  ;;  %p1036_p5 = scmp.lt.s32.totalorder %s1034_s6, %s1027_s29 }
  0x25   : > { %p1031_p12 = pneg %p1030_p4  ;;  %p1037_p8 = por %p1036_p5, %p1035_p11 }
  0x27   : > { %p1038_p9 = pnand %p1037_p8, %p1031_p12 }
  0x29   : > { %1041 = shalt.err (!%p1038_p9)
}
  0x2a   : > { %914 = dma.hbm_to_vmem [thread:$0]  (!%p1222_p13), %s1218_s8, 128, %s1226_s10, %s163_s12  }
  0x2b   : > { %p1669_p0 = scmp.lt.s32.totalorder %s1108_s18, 3  ;;  %p1670_p1 = scmp.ge.s32.totalorder %s1108_s18, 1 }
  0x2d   : > { %p180_p3 = pnand %p1670_p1, %p1669_p0 }
  0x2e   : > { %s1260_s7 = sand.u32 (!%p180_p3), 1, %s1100_s16  }
  0x2f   : > { %183 = sbr.rel (%p180_p3) target bundleno = 542 (0x21e), region = 36  ;;  %s895_s9 = sshll.u32 (!%p180_p3), %s1260_s7, 3 }
  0x30   : > { %s186_s13 = scalar_lea.sflag (!%p180_p3), [#allocation3], %s1260_s7  ;;  %s189_s11 = scalar_lea.vmem (!%p180_p3), [#allocation2], %s895_s9 }
  0x36   : > { %1087 = dma.done.wait (%p1198_p6), %s186_s13, 128  }
  0x37   : > { %1089 = vsyncadd (%p1198_p6), %s186_s13, 4294967168  ;;  %v1111_v0 = vmov 0   ;;  %vm218_vm0 = vcmask 1043456   ;;  %v1272_v1 = vld [vmem:[%s189_s11] sm:$0xff]  ;;  %s1112_s8 = smov 16   ;;  %s1113_s26 = smov 112   ;;  %v248_v21 = vlaneseq }
  0x38   : > { %971 = vset.pattern.permute.xlu1 %v1111_v0  ;;  %974 = vset.pattern.permute.xlu0 %v1111_v0  ;;  %v1276_v2 = vcombine.high %v1272_v1, %v1272_v1  ;;  %v219_v3 = vsel %vm218_vm0, %v1272_v1, 0.0  ;;  %v224_v4 = vmul.f32 %v1272_v1, %v1272_v1  ;;  %v1289_v11 = vld [vmem:[%s1661_s3] sm:$0xf]  ;;  %v1114_v12 = vmov 1   ;;  %v1299_v14 = vld [vmem:[%s1661_s3 + $0x8] sm:$0xf] }
  0x39   : > { %319 = vrot.lane.b32.xlu1 %v1272_v1, %s1112_s8  ;;  %v1115_v13 = vmov 2   ;;  %v1116_v15 = vmov 3   ;;  %v1117_v16 = vmov 4   ;;  %v1118_v17 = vmov 5   ;;  %v246_v55 = vld [vmem:[%s1659_s1] sm:$0xf] }
  0x3a   : > { %v220_v5 = vsel %vm218_vm0, %v1276_v2, 0.0  ;;  %v226_v6 = vcombine.high %v224_v4, %v224_v4  ;;  %v228_v7 = vsel %vm218_vm0, %v224_v4, 0.0  ;;  %v1119_v18 = vmov 6   ;;  %s1122_s25 = smov 125   ;;  %s1123_s29 = smov 127  }
  0x3b   : > { %v221_v8 = vadd.f32 %v220_v5, %v219_v3  ;;  %v1120_v19 = vmov 7   ;;  %v1121_v20 = vmov 8   ;;  %v1323_v22 = vand.u32 127, %v248_v21  ;;  %s1124_s30 = smov 126   ;;  %v898_v5 = vld [vmem:[%s1661_s3 + $0x4] sm:$0xf] }
  0x3c   : > { %v229_v9 = vsel %vm218_vm0, %v226_v6, 0.0  ;;  %v1325_v23 = vshrl.u32 %v248_v21, 7  ;;  %v1125_v3 = vmov 9   ;;  %v1126_v4 = vmov 10   ;;  %s213_s10 = scalar_lea.vmem [#allocation5], %s895_s9  ;;  %s804_s23 = scalar_lea.sflag [#allocation4], %s1260_s7 }
  0x3d   : > { %321 = vrot.lane.b32.xlu1 %v1276_v2, %s1112_s8  ;;  %222 = vadd.xlane.f32.xlu0 %v221_v8  ;;  %v230_v10 = vadd.f32 %v229_v9, %v228_v7  ;;  %vm323_vm1 = vcmp.lt.s32.totalorder %v1323_v22, 16  ;;  %vm317_vm2 = vcmp.ge.s32.totalorder %v1323_v22, 16  ;;  %v1127_v6 = vmov 11   ;;  %s1128_s8 = smov 1   ;;  %s818_s12 = sshll.u32 %s213_s10, 4  ;;  %s1616_s12 = int_to_ptr.vmem [resolvable:$true] %s818_s12 }
  0x3e   : > { %v1330_v25 = vsub.s32 0, %v1325_v23  ;;  %v1347_v33 = vsub.s32 1, %v1325_v23  ;;  %v1364_v51 = vsub.s32 3, %v1325_v23  ;;  %v1367_v54 = vsub.s32 2, %v1325_v23  ;;  %p1671_p11 = scmp.ne.s32.totalorder %s1666_s27, 0 }
  0x3f   : > { %vm334_vm5 = vcmp.lt.s32.totalorder %v1323_v22, 112  ;;  %vm771_vm7 = vcmp.lt.s32.totalorder %v1323_v22, 1  ;;  %vm784_vm10 = vcmp.lt.s32.totalorder %v1323_v22, 127 }
  0x41   : > { %330 = vrot.lane.b32.xlu1 %v1272_v1, %s1113_s26  ;;  %231 = vadd.xlane.f32.xlu0 %v230_v10 }
  0x45   : > { %342 = vperm.xlu1 %971, %v1289_v11  }
  0x49   : > { %972 = vset.pattern.permute.xlu1 %v1114_v12 }
  0x4a   : > { %356 = vperm.xlu1 %972, %v1289_v11  }
  0x4e   : > { %973 = vset.pattern.permute.xlu1 %v1115_v13 }
  0x4f   : > { %372 = vperm.xlu1 %973, %v1289_v11  }
  0x53   : > { %975 = vset.pattern.permute.xlu1 %v1114_v12 }
  0x54   : > { %678 = vperm.xlu1 %975, %v1299_v14  }
  0x57   : > { %672 = vperm.xlu0 %974, %v1299_v14  }
  0x58   : > { %976 = vset.pattern.permute.xlu1 %v1116_v15 }
  0x59   : > { %388 = vperm.xlu1 %976, %v1289_v11  }
  0x5b   : > { %977 = vset.pattern.permute.xlu0 %v1115_v13 }
  0x5c   : > { %686 = vperm.xlu0 %977, %v1299_v14  }
  0x5d   : > { %978 = vset.pattern.permute.xlu1 %v1117_v16 }
  0x5e   : > { %404 = vperm.xlu1 %978, %v1289_v11  }
  0x60   : > { %980 = vset.pattern.permute.xlu0 %v1118_v17 }
  0x61   : > { %430 = vperm.xlu0 %980, %v1289_v11  }
  0x62   : > { %979 = vset.pattern.permute.xlu1 %v1116_v15 }
  0x63   : > { %694 = vperm.xlu1 %979, %v1299_v14  }
  0x65   : > { %710 = vperm.xlu0 %980, %v1299_v14  }
  0x67   : > { %981 = vset.pattern.permute.xlu1 %v1117_v16 }
  0x68   : > { %702 = vperm.xlu1 %981, %v1299_v14  }
  0x69   : > { %984 = vset.pattern.permute.xlu0 %v1119_v18 }
  0x6c   : > { %982 = vset.pattern.permute.xlu1 %v1119_v18 }
  0x6d   : > { %456 = vperm.xlu1 %982, %v1289_v11  }
  0x71   : > { %983 = vset.pattern.permute.xlu1 %v1120_v19 }
  0x72   : > { %482 = vperm.xlu1 %983, %v1289_v11  }
  0x76   : > { %985 = vset.pattern.permute.xlu1 %v1121_v20 }
  0xab   : > { %v320_v24 = vpop.permute.xlu1 %319 }
  0xaf   : > { %v322_v26 = vpop.permute.xlu1 %321 }
  0xb0   : > { %v1332_v27 = vsel %vm323_vm1, %v320_v24, %v322_v26  ;;  %v325_v28 = vsel %vm323_vm1, %v322_v26, %v320_v24 }
  0xb1   : > { %v1334_v29 = vsel %vm317_vm2, %v325_v28, 0.0  ;;  %v1338_v30 = vrot.slane %v1332_v27, %v1330_v25  ;;  %v1353_v35 = vrot.slane %v1332_v27, %v1347_v33 }
  0xb2   : > { %v1342_v31 = vrot.slane %v1334_v29, %v1330_v25  ;;  %v1424_v24 = vrot.slane %v1334_v29, %v1347_v33 }
  0xb3   : > { %v1344_v32 = vpop.permute.xlu1 %330 }
  0xc4   : > { %v1349_v34 = vpop.permute.xlu1 %342 }
  0xc5   : > { %v354_v36 = vmul.f32 %v1338_v30, %v1349_v34 }
  0xc9   : > { %v1357_v37 = vpop.permute.xlu1 %356 }
  0xca   : > { %v368_v38 = vmul.f32 %v1353_v35, %v1357_v37  ;;  %v223_v39 = vpop.xlane.xlu0 %222 }
  0xcb   : > { %v233_v40 = vmul.f32 0.00390625, %v223_v39  ;;  %v367_v39 = vmul.f32 %v1424_v24, %v1357_v37  ;;  %v439_v37 = vsub.s32 5, %v1325_v23 }
  0xcc   : > { %v1361_v41 = vadd.f32 %v368_v38, %v354_v36  ;;  %v353_v38 = vmul.f32 %v1342_v31, %v1349_v34  ;;  %v410_v34 = vrot.slane %v1272_v1, %v1330_v25 }
  0xcd   : > { %v235_v43 = vmul.f32 %v233_v40, %v233_v40 }
  0xce   : > { %v232_v42 = vpop.xlane.xlu0 %231 }
  0xcf   : > { %v234_v44 = vmul.f32 0.00390625, %v232_v42 }
  0xd1   : > { %v236_v45 = vsub.f32 %v234_v44, %v235_v43  ;;  %v1436_v43 = vrot.slane %v1332_v27, %v1367_v54  ;;  %v413_v44 = vsub.s32 4, %v1325_v23 }
  0xd3   : > { %v237_v46 = vmax.f32 %v236_v45, 0.0  ;;  %v1441_v45 = vrot.slane %v1334_v29, %v1364_v51 }
  0xd5   : > { %1006 = vrsqrt.f32 %v237_v46  ;;  %vm240_vm3 = vcmp.eq.f32.partialorder %v237_v46, inf  ;;  %v243_v49 = vand.u32 2147483648, %v237_v46  ;;  %vm242_vm4 = vcmp.eq.f32.partialorder %v237_v46, 0.0 }
  0xd6   : > { %v673_v10 = vpop.permute.xlu0 %672 }
  0xdf   : > { %v1007_v47 = vpop.eup %1006 }
  0xe0   : > { %v239_v48 = vmul.f32 %v1007_v47, %v237_v46 }
  0xe2   : > { %v241_v50 = vsel %vm240_vm3, %v237_v46, %v239_v48  ;;  %v369_v46 = vadd.f32 %v367_v39, %v353_v38 }
  0xe3   : > { %v244_v52 = vsel %vm242_vm4, %v243_v49, %v241_v50  ;;  %v675_v49 = vmul.f32 %v673_v10, %v1342_v31  ;;  %v1451_v50 = vrot.slane %v1332_v27, %v1364_v51 }
  0xe4   : > { %v245_v53 = vadd.f32 %v244_v52, %v233_v40  ;;  %v1432_v40 = vrot.slane %v1334_v29, %v1367_v54  ;;  %v414_v29 = vrot.slane %v1272_v1, %v413_v44  ;;  %v488_v44 = vrot.slane %v1272_v1, %v1364_v51 }
  0xe6   : > { %v277_v56 = vrot.slane %v245_v53, %v1364_v51  ;;  %v257_v57 = vrot.slane %v245_v53, %v1347_v33  ;;  %v251_v58 = vrot.slane %v245_v53, %v1330_v25  ;;  %v267_v61 = vrot.slane %v245_v53, %v1367_v54 }
  0xe8   : > { %v278_v59 = vmul.f32 %v277_v56, %v246_v55  ;;  %v258_v60 = vmul.f32 %v257_v57, %v246_v55  ;;  %v1376_v62 = vmul.f32 %v251_v58, %v246_v55  ;;  %v268_v63 = vmul.f32 %v267_v61, %v246_v55 }
  0xe9   : > { %v676_v55 = vmul.f32 %v673_v10, %v1338_v30  ;;  %v1458_v56 = vrot.slane %v410_v34, %v1330_v25  ;;  %v436_v57 = vrot.slane %v1272_v1, %v1347_v33  ;;  %v440_v58 = vrot.slane %v1272_v1, %v439_v37 }
  0xea   : > { %280 = vrot.lane.b32.xlu0 %v278_v59, %s1122_s25  ;;  %260 = vrot.lane.b32.xlu1 %v258_v60, %s1123_s29  ;;  %v465_v59 = vsub.s32 6, %v1325_v23  ;;  %v462_v10 = vrot.slane %v1272_v1, %v1367_v54  ;;  %s1042_s25 = scalar_lea.vmem %s1616_s12, 128 }
  0xeb   : > { %p1043_p6 = scmp.ne.s32.totalorder %s1616_s12, %s1042_s25 }
  0xed   : > { %p1044_p12 = pnand %p1043_p6, %p1671_p11 }
  0xee   : > { %718 = vperm.xlu0 %984, %v1299_v14   ;;  %270 = vrot.lane.b32.xlu1 %v268_v63, %s1124_s30 }
  0xef   : > { %p1045_p13 = pneg %p1044_p12 }
  0xf2   : > { %987 = vset.pattern.permute.xlu0 %v1125_v3  ;;  %508 = vperm.xlu1 %985, %v1289_v11  }
  0xf3   : > { %524 = vperm.xlu0 %987, %v1289_v11  }
  0xf6   : > { %986 = vset.pattern.permute.xlu1 %v1120_v19 }
  0xf7   : > { %989 = vset.pattern.permute.xlu0 %v1126_v4  ;;  %726 = vperm.xlu1 %986, %v1299_v14  }
  0xf8   : > { %540 = vperm.xlu0 %989, %v1289_v11  }
  0xfb   : > { %988 = vset.pattern.permute.xlu1 %v1121_v20 }
  0xfc   : > { %750 = vperm.xlu0 %989, %v1299_v14   ;;  %734 = vperm.xlu1 %988, %v1299_v14  }
 0x100   : > { %992 = vset.pattern.permute.xlu0 %v1111_v0  ;;  %332 = vrot.lane.b32.xlu1 %v1276_v2, %s1113_s26  ;;  %v373_v2 = vpop.permute.xlu1 %372  ;;  %s906_s26 = sshll.u32 %s1176_s19, 7  ;;  %s1129_s19 = smov [#allocation5]  }
 0x101   : > { %575 = vperm.xlu0 %992, %v898_v5   ;;  %990 = vset.pattern.permute.xlu1 %v1125_v3  ;;  %v383_v47 = vmul.f32 %v1432_v40, %v373_v2  ;;  %v384_v52 = vmul.f32 %v1436_v43, %v373_v2  ;;  %v1473_v2 = vrot.slane %v436_v57, %v1347_v33  ;;  %s1614_s22 = scalar_lea.hbm %s1662_s4, %s906_s26  ;;  %s1046_s9 = sshll.u32 %s1129_s19, 4  ;;  %s1047_s9 = int_to_ptr.vmem [resolvable:$false] %s1046_s9 }
 0x102   : > { %p1049_p7 = scmp.lt.s32.totalorder %s1616_s12, %s1047_s9 }
 0x103   : > { %v385_v27 = vadd.f32 %v383_v47, %v369_v46  ;;  %v386_v63 = vadd.f32 %v384_v52, %v1361_v41 }
 0x104   : > { %742 = vperm.xlu1 %990, %v1299_v14   ;;  %v679_v7 = vpop.permute.xlu1 %678 }
 0x105   : > { %995 = vset.pattern.permute.xlu0 %v1116_v15  ;;  %v681_v48 = vmul.f32 %v679_v7, %v1424_v24  ;;  %v682_v53 = vmul.f32 %v679_v7, %v1353_v35  ;;  %v1476_v7 = vrot.slane %v440_v58, %v1347_v33 }
 0x106   : > { %597 = vperm.xlu0 %995, %v898_v5  }
 0x107   : > { %v683_v61 = vadd.f32 %v681_v48, %v675_v49 }
 0x108   : > { %991 = vset.pattern.permute.xlu1 %v1127_v6 }
 0x109   : > { %556 = vperm.xlu1 %991, %v1289_v11  }
 0x10a   : > { %998 = vset.pattern.permute.xlu0 %v1119_v18 }
 0x10b   : > { %621 = vperm.xlu0 %998, %v898_v5  }
 0x10d   : > { %758 = vperm.xlu1 %991, %v1299_v14  }
 0x10f   : > { %1001 = vset.pattern.permute.xlu0 %v1125_v3 }
 0x110   : > { %645 = vperm.xlu0 %1001, %v898_v5  }
 0x111   : > { %993 = vset.pattern.permute.xlu1 %v1114_v12  ;;  %v687_v12 = vpop.permute.xlu0 %686 }
 0x112   : > { %581 = vperm.xlu1 %993, %v898_v5  }
 0x114   : > { %1004 = vset.pattern.permute.xlu0 %v1111_v0  ;;  %v389_v0 = vpop.permute.xlu1 %388 }
 0x115   : > { %v1412_v14 = vpop.permute.xlu0 %430  ;;  %v399_v60 = vmul.f32 %v1441_v45, %v389_v0  ;;  %v400_v3 = vmul.f32 %v1451_v50, %v389_v0 }
 0x116   : > { %994 = vset.pattern.permute.xlu1 %v1115_v13 }
 0x117   : > { %589 = vperm.xlu1 %994, %v898_v5  }
 0x118   : > { %v405_v8 = vpop.permute.xlu1 %404 }
 0x119   : > { %v425_v0 = vmul.f32 %v1458_v56, %v405_v8 }
 0x11b   : > { %996 = vset.pattern.permute.xlu1 %v1117_v16  ;;  %v247_v16 = vld [vmem:[%s1660_s2] sm:$0xf] }
 0x11c   : > { %605 = vperm.xlu1 %996, %v898_v5   ;;  %v1406_v9 = vpop.permute.xlu1 %694  ;;  %v253_v18 = vadd.f32 %v1376_v62, %v247_v16  ;;  %v689_v62 = vmul.f32 %v687_v12, %v1432_v40  ;;  %v466_v16 = vrot.slane %v1272_v1, %v465_v59 }
 0x11d   : > { %v698_v38 = vmul.f32 %v1406_v9, %v1451_v50 }
 0x11e   : > { %v1502_v47 = vrot.slane %v466_v16, %v1367_v54 }
 0x120   : > { %997 = vset.pattern.permute.xlu1 %v1118_v17  ;;  %v1408_v11 = vpop.permute.xlu1 %702 }
 0x121   : > { %613 = vperm.xlu1 %997, %v898_v5   ;;  %v705_v46 = vmul.f32 %v1408_v11, %v1458_v56 }
 0x124   : > { %v1410_v13 = vpop.permute.xlu1 %456 }
 0x125   : > { %999 = vset.pattern.permute.xlu1 %v1120_v19  ;;  %v1420_v19 = vpop.permute.xlu0 %710 }
 0x126   : > { %629 = vperm.xlu1 %999, %v898_v5  }
 0x128   : > { %v1414_v15 = vpop.permute.xlu1 %482 }
 0x12a   : > { %1000 = vset.pattern.permute.xlu1 %v1121_v20 }
 0x12b   : > { %637 = vperm.xlu1 %1000, %v898_v5  }
 0x12f   : > { %1002 = vset.pattern.permute.xlu1 %v1126_v4  ;;  %v1469_v4 = vrot.slane %v414_v29, %v1330_v25 }
 0x130   : > { %653 = vperm.xlu1 %1002, %v898_v5  }
 0x131   : > { %v706_v29 = vmul.f32 %v1408_v11, %v1469_v4  ;;  %v1520_v11 = vadd.s32 128, %v1323_v22 }
 0x133   : > { %vm329_vm6 = vcmp.lt.s32.totalorder %v1520_v11, 240 }
 0x134   : > { %1003 = vset.pattern.permute.xlu1 %v1127_v6  ;;  %v690_v6 = vmul.f32 %v687_v12, %v1436_v43 }
 0x135   : > { %661 = vperm.xlu1 %1003, %v898_v5   ;;  %v684_v5 = vadd.f32 %v682_v53, %v676_v55  ;;  %v1508_v53 = vrot.slane %v488_v44, %v1364_v51 }
 0x137   : > { %v692_v39 = vadd.f32 %v690_v6, %v684_v5 }
 0x139   : > { %v700_v52 = vadd.f32 %v698_v38, %v692_v39 }
 0x15c   : > { %v261_v17 = vpop.permute.xlu1 %260  ;;  %v281_v28 = vpop.permute.xlu0 %280 }
 0x15d   : > { %v263_v20 = vadd.f32 %v261_v17, %v253_v18  ;;  %v401_v17 = vadd.f32 %v399_v60, %v385_v27  ;;  %v697_v18 = vmul.f32 %v1406_v9, %v1441_v45  ;;  %v452_v9 = vmul.f32 %v1476_v7, %v1412_v14 }
 0x15f   : > { %v427_v34 = vadd.f32 %v425_v0, %v401_v17 }
 0x160   : > { %v271_v21 = vpop.permute.xlu1 %270 }
 0x161   : > { %v273_v26 = vadd.f32 %v271_v21, %v263_v20  ;;  %v691_v20 = vadd.f32 %v689_v62, %v683_v61  ;;  %v402_v21 = vadd.f32 %v400_v3, %v386_v63  ;;  %v708_v61 = vadd.f32 %v706_v29, %v700_v52 }
 0x162   : > { %v714_v62 = vmul.f32 %v1420_v19, %v1476_v7 }
 0x163   : > { %v283_v36 = vadd.f32 %v281_v28, %v273_v26  ;;  %v426_v26 = vmul.f32 %v1469_v4, %v405_v8  ;;  %v491_v28 = vsub.s32 7, %v1325_v23  ;;  %v699_v37 = vadd.f32 %v697_v18, %v691_v20 }
 0x164   : > { %v451_v23 = vmul.f32 %v1473_v2, %v1412_v14  ;;  %v713_v14 = vmul.f32 %v1420_v19, %v1473_v2  ;;  %v716_v19 = vadd.f32 %v714_v62, %v708_v61 }
 0x165   : > { %v897_v42 = vmul.f32 -1.442695, %v283_v36  ;;  %v428_v8 = vadd.f32 %v426_v26, %v402_v21  ;;  %v492_v48 = vrot.slane %v1272_v1, %v491_v28  ;;  %v707_v55 = vadd.f32 %v705_v46, %v699_v37 }
 0x166   : > { %v453_v57 = vadd.f32 %v451_v23, %v427_v34  ;;  %v478_v1 = vmul.f32 %v1502_v47, %v1410_v13 }
 0x167   : > { %1008 = vpow2.f32 %v897_v42  ;;  %v1491_v42 = vrot.slane %v462_v10, %v1367_v54  ;;  %v454_v27 = vadd.f32 %v452_v9, %v428_v8  ;;  %v1517_v60 = vrot.slane %v492_v48, %v1364_v51 }
 0x168   : > { %v715_v6 = vadd.f32 %v713_v14, %v707_v55  ;;  %v503_v10 = vmul.f32 %v1508_v53, %v1414_v15 }
 0x169   : > { %v477_v58 = vmul.f32 %v1491_v42, %v1410_v13  ;;  %v480_v16 = vadd.f32 %v478_v1, %v454_v27 }
 0x16b   : > { %v479_v5 = vadd.f32 %v477_v58, %v453_v57 }
 0x16d   : > { %v719_v59 = vpop.permute.xlu0 %718 }
 0x16e   : > { %v721_v3 = vmul.f32 %v719_v59, %v1491_v42  ;;  %v722_v20 = vmul.f32 %v719_v59, %v1502_v47 }
 0x170   : > { %v723_v21 = vadd.f32 %v721_v3, %v715_v6  ;;  %v724_v52 = vadd.f32 %v722_v20, %v716_v19 }
 0x171   : > { %v1009_v41 = vpop.eup %1008  ;;  %v1484_v12 = vpop.permute.xlu1 %508 }
 0x172   : > { %v287_v36 = vadd.f32 1.0, %v1009_v41  ;;  %v504_v41 = vmul.f32 %v1517_v60, %v1414_v15  ;;  %v525_v17 = vpop.permute.xlu0 %524 }
 0x174   : > { %1010 = vrcp.f32 %v287_v36  ;;  %v505_v36 = vadd.f32 %v503_v10, %v479_v5  ;;  %v506_v44 = vadd.f32 %v504_v41, %v480_v16 }
 0x176   : > { %v727_v49 = vpop.permute.xlu1 %726 }
 0x177   : > { %v729_v0 = vmul.f32 %v727_v49, %v1508_v53  ;;  %v730_v34 = vmul.f32 %v727_v49, %v1517_v60  ;;  %v541_v29 = vpop.permute.xlu0 %540 }
 0x179   : > { %v731_v37 = vadd.f32 %v729_v0, %v723_v21  ;;  %v732_v59 = vadd.f32 %v730_v34, %v724_v52 }
 0x17b   : > { %v735_v63 = vpop.permute.xlu1 %734  ;;  %v751_v41 = vpop.permute.xlu0 %750 }
 0x17e   : > { %v1011_v13 = vpop.eup %1010 }
 0x17f   : > { %v333_v18 = vpop.permute.xlu1 %332  ;;  %793 = vperm.xlu0 %1004, %v1011_v13  }
 0x180   : > { %v335_v26 = vsel %vm334_vm5, %v1344_v32, %v333_v18  ;;  %v336_v28 = vsel %vm334_vm5, %v333_v18, %v1344_v32 }
 0x181   : > { %v338_v38 = vsel %vm329_vm6, %v336_v28, 0.0  ;;  %v1536_v39 = vrot.slane %v335_v26, %v1330_v25  ;;  %v1539_v15 = vrot.slane %v335_v26, %v1347_v33  ;;  %v1548_v32 = vrot.slane %v335_v26, %v1367_v54 }
 0x182   : > { %v1543_v46 = vrot.slane %v338_v38, %v1330_v25  ;;  %v1551_v8 = vrot.slane %v338_v38, %v1347_v33  ;;  %v1559_v57 = vrot.slane %v338_v38, %v1367_v54  ;;  %v1563_v1 = vrot.slane %v335_v26, %v1364_v51 }
 0x183   : > { %v519_v23 = vmul.f32 %v1536_v39, %v1484_v12  ;;  %v737_v9 = vmul.f32 %v735_v63, %v1536_v39  ;;  %v743_v48 = vpop.permute.xlu1 %742  ;;  %v535_v33 = vmul.f32 %v1539_v15, %v525_v17  ;;  %v1568_v5 = vrot.slane %v338_v38, %v1364_v51 }
 0x184   : > { %v520_v49 = vmul.f32 %v1543_v46, %v1484_v12  ;;  %v738_v25 = vmul.f32 %v735_v63, %v1543_v46  ;;  %v745_v55 = vmul.f32 %v743_v48, %v1539_v15  ;;  %v536_v61 = vmul.f32 %v1551_v8, %v525_v17 }
 0x185   : > { %v739_v58 = vadd.f32 %v737_v9, %v731_v37  ;;  %v521_v14 = vadd.f32 %v519_v23, %v505_v36  ;;  %v551_v12 = vmul.f32 %v1548_v32, %v541_v29  ;;  %v552_v10 = vmul.f32 %v1559_v57, %v541_v29  ;;  %v576_v9 = vpop.permute.xlu0 %575 }
 0x186   : > { %v522_v27 = vadd.f32 %v520_v49, %v506_v44  ;;  %v740_v63 = vadd.f32 %v738_v25, %v732_v59  ;;  %v746_v0 = vmul.f32 %v743_v48, %v1551_v8  ;;  %v753_v20 = vmul.f32 %v751_v41, %v1548_v32 }
 0x187   : > { %v537_v62 = vadd.f32 %v535_v33, %v521_v14  ;;  %v747_v3 = vadd.f32 %v745_v55, %v739_v58  ;;  %v754_v38 = vmul.f32 %v751_v41, %v1559_v57  ;;  %v578_v49 = vmul.f32 %v576_v9, %v1342_v31 }
 0x188   : > { %v557_v54 = vpop.permute.xlu1 %556  ;;  %v538_v6 = vadd.f32 %v536_v61, %v522_v27  ;;  %v748_v26 = vadd.f32 %v746_v0, %v740_v63  ;;  %v579_v25 = vmul.f32 %v576_v9, %v1338_v30 }
 0x189   : > { %v553_v13 = vadd.f32 %v551_v12, %v537_v62  ;;  %v567_v16 = vmul.f32 %v1563_v1, %v557_v54  ;;  %v568_v17 = vmul.f32 %v1568_v5, %v557_v54  ;;  %v755_v51 = vadd.f32 %v753_v20, %v747_v3  ;;  %v598_v27 = vpop.permute.xlu0 %597 }
 0x18a   : > { %v554_v19 = vadd.f32 %v552_v10, %v538_v6  ;;  %v756_v37 = vadd.f32 %v754_v38, %v748_v26 }
 0x18b   : > { %v569_v18 = vadd.f32 %v567_v16, %v553_v13 }
 0x18c   : > { %v759_v21 = vpop.permute.xlu1 %758  ;;  %v570_v36 = vadd.f32 %v568_v17, %v554_v19 }
 0x18d   : > { %v761_v28 = vmul.f32 %v759_v21, %v1563_v1  ;;  %767 = vrot.lane.b32.xlu1 %v569_v18, %s1128_s8  ;;  %v762_v44 = vmul.f32 %v759_v21, %v1568_v5  ;;  %v622_v13 = vpop.permute.xlu0 %621 }
 0x18e   : > { %v624_v16 = vmul.f32 %v622_v13, %v1491_v42 }
 0x18f   : > { %v763_v34 = vadd.f32 %v761_v28, %v755_v51  ;;  %v764_v48 = vadd.f32 %v762_v44, %v756_v37 }
 0x191   : > { %v582_v23 = vpop.permute.xlu1 %581  ;;  %769 = vrot.lane.b32.xlu1 %v570_v36, %s1128_s8  ;;  %780 = vrot.lane.b32.xlu0 %v763_v34, %s1123_s29  ;;  %v646_v18 = vpop.permute.xlu0 %645 }
 0x192   : > { %v584_v52 = vmul.f32 %v582_v23, %v1424_v24  ;;  %v585_v29 = vmul.f32 %v582_v23, %v1353_v35  ;;  %v600_v24 = vmul.f32 %v598_v27, %v1441_v45  ;;  %v601_v35 = vmul.f32 %v598_v27, %v1451_v50 }
 0x193   : > { %v625_v45 = vmul.f32 %v622_v13, %v1502_v47  ;;  %v648_v42 = vmul.f32 %v646_v18, %v1539_v15  ;;  %v649_v47 = vmul.f32 %v646_v18, %v1551_v8  ;;  %v297_v8 = vand.u32 15, %v1323_v22 }
 0x194   : > { %v586_v58 = vadd.f32 %v584_v52, %v578_v49  ;;  %v587_v14 = vadd.f32 %v585_v29, %v579_v25 }
 0x195   : > { %782 = vrot.lane.b32.xlu1 %v764_v48, %s1123_s29  ;;  %v304_v48 = vand.u32 15, %v1520_v11  ;;  %vm765_vm8 = vcmp.ge.s32.totalorder %v297_v8, 1  ;;  %vm778_vm11 = vcmp.lt.s32.totalorder %v297_v8, 15  ;;  %s1048_s29 = scalar_lea.vmem %s1047_s9, 256 }
 0x196   : > { %v590_v55 = vpop.permute.xlu1 %589  ;;  %p1050_p10 = scmp.lt.s32.totalorder %s1048_s29, %s1042_s25 }
 0x197   : > { %v592_v33 = vmul.f32 %v590_v55, %v1432_v40  ;;  %v593_v59 = vmul.f32 %v590_v55, %v1436_v43  ;;  %vm766_vm9 = vcmp.ge.s32.totalorder %v304_v48, 1  ;;  %vm779_vm12 = vcmp.lt.s32.totalorder %v304_v48, 15 }
 0x198   : > { %p1051_p2 = por %p1050_p10, %p1049_p7 }
 0x199   : > { %v594_v61 = vadd.f32 %v592_v33, %v586_v58  ;;  %v595_v62 = vadd.f32 %v593_v59, %v587_v14 }
 0x19a   : > { %p1052_p4 = pnand %p1051_p2, %p1045_p13 }
 0x19b   : > { %v606_v12 = vpop.permute.xlu1 %605  ;;  %v602_v31 = vadd.f32 %v600_v24, %v594_v61  ;;  %v603_v63 = vadd.f32 %v601_v35, %v595_v62 }
 0x19c   : > { %v608_v30 = vmul.f32 %v606_v12, %v1458_v56  ;;  %v609_v3 = vmul.f32 %v606_v12, %v1469_v4 }
 0x19e   : > { %v610_v6 = vadd.f32 %v608_v30, %v602_v31  ;;  %v611_v10 = vadd.f32 %v609_v3, %v603_v63 }
 0x1a0   : > { %v614_v54 = vpop.permute.xlu1 %613 }
 0x1a1   : > { %v616_v40 = vmul.f32 %v614_v54, %v1473_v2  ;;  %v617_v43 = vmul.f32 %v614_v54, %v1476_v7 }
 0x1a3   : > { %v618_v50 = vadd.f32 %v616_v40, %v610_v6  ;;  %v619_v41 = vadd.f32 %v617_v43, %v611_v10 }
 0x1a5   : > { %v630_v0 = vpop.permute.xlu1 %629  ;;  %v626_v19 = vadd.f32 %v624_v16, %v618_v50  ;;  %v627_v17 = vadd.f32 %v625_v45, %v619_v41 }
 0x1a6   : > { %v632_v56 = vmul.f32 %v630_v0, %v1508_v53  ;;  %v633_v4 = vmul.f32 %v630_v0, %v1517_v60 }
 0x1a8   : > { %v634_v21 = vadd.f32 %v632_v56, %v626_v19  ;;  %v635_v2 = vadd.f32 %v633_v4, %v627_v17 }
 0x1aa   : > { %v638_v20 = vpop.permute.xlu1 %637 }
 0x1ab   : > { %v640_v7 = vmul.f32 %v638_v20, %v1536_v39  ;;  %v641_v26 = vmul.f32 %v638_v20, %v1543_v46 }
 0x1ad   : > { %v642_v51 = vadd.f32 %v640_v7, %v634_v21  ;;  %v643_v28 = vadd.f32 %v641_v26, %v635_v2 }
 0x1af   : > { %v654_v36 = vpop.permute.xlu1 %653  ;;  %v650_v38 = vadd.f32 %v648_v42, %v642_v51  ;;  %v651_v44 = vadd.f32 %v649_v47, %v643_v28 }
 0x1b0   : > { %v656_v53 = vmul.f32 %v654_v36, %v1548_v32  ;;  %v657_v60 = vmul.f32 %v654_v36, %v1559_v57 }
 0x1b2   : > { %v658_v34 = vadd.f32 %v656_v53, %v650_v38  ;;  %v659_v37 = vadd.f32 %v657_v60, %v651_v44 }
 0x1b4   : > { %v662_v23 = vpop.permute.xlu1 %661 }
 0x1b5   : > { %v664_v39 = vmul.f32 %v662_v23, %v1563_v1  ;;  %v665_v46 = vmul.f32 %v662_v23, %v1568_v5 }
 0x1b7   : > { %v666_v9 = vadd.f32 %v664_v39, %v658_v34  ;;  %v667_v15 = vadd.f32 %v665_v46, %v659_v37 }
 0x1fe   : > { %v794_v29 = vpop.permute.xlu0 %793 }
 0x1ff   : > { %v768_v52 = vpop.permute.xlu1 %767 }
 0x203   : > { %v770_v32 = vpop.permute.xlu1 %769  ;;  %v781_v5 = vpop.permute.xlu0 %780 }
 0x204   : > { %v772_v57 = vsel %vm771_vm7, %v768_v52, %v770_v32  ;;  %v773_v49 = vsel %vm771_vm7, %v770_v32, %v768_v52 }
 0x205   : > { %v774_v25 = vsel %vm765_vm8, %v773_v49, 0.0  ;;  %v775_v1 = vsel %vm766_vm9, %v772_v57, 0.0 }
 0x206   : > { %v776_v11 = vadd.f32 %v774_v25, %v666_v9  ;;  %v777_v58 = vadd.f32 %v775_v1, %v667_v15 }
 0x207   : > { %v783_v55 = vpop.permute.xlu1 %782 }
 0x208   : > { %v785_v14 = vsel %vm784_vm10, %v781_v5, %v783_v55  ;;  %v786_v33 = vsel %vm784_vm10, %v783_v55, %v781_v5 }
 0x209   : > { %v787_v59 = vsel %vm778_vm11, %v785_v14, 0.0  ;;  %v788_v27 = vsel %vm779_vm12, %v786_v33, 0.0 }
 0x20a   : > { %v789_v61 = vadd.f32 %v787_v59, %v776_v11  ;;  %v790_v62 = vadd.f32 %v788_v27, %v777_v58 }
 0x20c   : > { %v796_v24 = vmul.f32 %v794_v29, %v789_v61  ;;  %v797_v22 = vmul.f32 %v794_v29, %v790_v62 }
 0x20e   : > { %v800_v35 = vcombine.low %v796_v24, %v797_v22 }
 0x210   : > { %802 = vst [vmem:[%s213_s10] sm:$0xff] %v800_v35 }
 0x211   : > { %1055 = shalt.err (!%p1052_p4)
}
 0x212   : > { %s1056_s7 = scalar_lea.hbm %s1614_s22, 128  ;;  %s1060_s6 = scalar_lea.hbm %s1662_s4, 256 }
 0x213   : > { %p1057_p5 = scmp.ne.s32.totalorder %s1614_s22, %s1056_s7  ;;  %p1061_p0 = scmp.lt.u32.totalorder %s1614_s22, %s1662_s4 }
 0x214   : > { %p1062_p1 = scmp.lt.u32.totalorder %s1060_s6, %s1056_s7  ;;  %p1064_p6 = scmp.lt.u32.totalorder %s1056_s7, %s1614_s22 }
 0x215   : > { %p1058_p8 = pnand %p1057_p5, %p1671_p11 }
 0x216   : > { %p1063_p3 = por %p1062_p1, %p1061_p0 }
 0x217   : > { %p1059_p9 = pneg %p1058_p8 }
 0x218   : > { %p1065_p12 = por %p1064_p6, %p1063_p3 }
 0x21a   : > { %p1066_p13 = pnand %p1065_p12, %p1059_p9 }
 0x21c   : > { %1069 = shalt.err (!%p1066_p13)
}
 0x21d   : > { %909 = dma.vmem_to_hbm [thread:$0]  (%p1671_p11), %s1616_s12, 128, %s1614_s22, %s804_s23  }
 0x21e PF: > { %s830_s8 = sand.u32 1, %s1096_s15   ;;  %p1672_p7 = scmp.ne.s32.totalorder %s1667_s28, 0 }
 0x21f   : > { %p1673_p10 = scmp.ge.s32.totalorder %s1108_s18, 2  ;;  %s831_s26 = scalar_lea.sflag [#allocation4], %s830_s8 }
 0x221   : > { %p916_p2 = pnand %p1673_p10, %p1672_p7 }
 0x223   : > { %1091 = dma.done.wait (!%p916_p2), %s831_s26, 128  }
 0x224   : > { %1093 = vsyncadd (!%p916_p2), %s831_s26, 4294967168  ;;  %p17_p4 = scmp.ge.s32.totalorder %s1180_s21, 4   ;;  %s1674_s15 = smov %s1100_s16 }
 0x225   : > { %s1675_s16 = smov %s1104_s17  ;;  %s1676_s17 = smov %s1192_s24 }
 0x226   : > { %s1677_s18 = smov %s1180_s21  ;;  %19 = sbr.rel (!%p17_p4) target bundleno = 5 (0x5), region = 83 }
 0x22d   :  { %836 = vsyncpa [#allocation3], 1 }
 0x22e   :  { %838 = vsyncpa [#allocation3 + $0x1], 1 }
 0x22f   :  { %839 = vsyncpa [#allocation4], 1 }
 0x230   :  { %841 = vsyncpa [#allocation4 + $0x1], 1 }

</bundles_post_ra>
